<compile_context>
chip_gen: v6e
topology: v6e:2x2x1
jax: 0.10.0
libtpu: 0.0.40
codegen_flags: <defaults>
</compile_context>

<pallas_src>
import jax
import jax.numpy as jnp
from jax.experimental import pallas as pl
from jax.experimental.pallas import tpu as pltpu


def _round_up(x, m):
    return (x + m - 1) // m * m


def _vmem_cap_bytes():
    """~75% of physical VMEM (compiler needs internal scratch headroom)."""
    try:
        phys = int(pltpu.get_tpu_info().vmem_capacity_bytes)
    except Exception:
        phys = 64 << 20                      # conservative fallback (v7x-sized)
    return max(32 << 20, (phys // 4) * 3)    # v7x: 48 MiB, v5e/v6e: 96 MiB


def _pred_kernel(x_ref, w_ref, b_ref, scores_ref, lse_ref, m_sc, l_sc):
    """One (row-tile, vocab-tile) step of projection + online logsumexp."""
    j = pl.program_id(1)                     # vocab-tile index (inner axis)

    # Reset the online-softmax carries at the first vocab tile of a row tile.
    @pl.when(j == 0)
    def _():
        m_sc[...] = jnp.full_like(m_sc, -1e30)
        l_sc[...] = jnp.zeros_like(l_sc)

    # Natural (M,K)x(K,N) MXU contraction, f32 accumulation.
    scores = jnp.dot(x_ref[...], w_ref[...],
                     preferred_element_type=jnp.float32)
    scores = scores + b_ref[...]             # (tn, tv) f32
    scores_ref[...] = scores.astype(scores_ref.dtype)   # bf16 writeback

    # ---- online logsumexp (numerically stable, f32) ----
    m_prev = m_sc[...]                                           # (tn, 1)
    m_new = jnp.maximum(m_prev, jnp.max(scores, axis=-1, keepdims=True))
    l_sc[...] = (l_sc[...] * jnp.exp(m_prev - m_new)
                 + jnp.sum(jnp.exp(scores - m_new), axis=-1, keepdims=True))
    m_sc[...] = m_new

    # ---- finalize per-row logsumexp at the last vocab tile ----
    @pl.when(j == pl.num_programs(1) - 1)
    def _():
        lse_ref[...] = m_sc[...] + jnp.log(l_sc[...])


def prepare_pred_params(weight, bias, *, vocab_tile=1024):
    """One-time (per parameter set) prep, amortized across forward calls:
    transpose weight (n_words, emb_dim) -> (emb_dim, V_pad) bf16, pad vocab,
    and pick the vocab tile.  Padded vocab columns get a -1e30 bias so they
    vanish from the logsumexp."""
    n_words, emb_dim = weight.shape
    v128 = _round_up(n_words, 128)
    tv = min(vocab_tile, v128)
    # Prefer a vocab tile that divides the 128-padded vocab (no padded columns
    # written, no post-kernel slice copy), but don't shrink below tv/2.
    if v128 % tv != 0:
        cand = tv - 128
        while cand >= max(128, tv // 2):
            if v128 % cand == 0:
                tv = cand
                break
            cand -= 128
    v_pad = _round_up(v128, tv)

    wt = weight.astype(jnp.bfloat16).T                       # (D, V) bf16
    if v_pad != n_words:
        wp = jnp.zeros((emb_dim, v_pad), jnp.bfloat16).at[:, :n_words].set(wt)
        bp = jnp.full((1, v_pad), -1e30, jnp.float32).at[0, :n_words].set(
            bias.astype(jnp.float32))
    else:
        wp = wt
        bp = bias.astype(jnp.float32).reshape(1, v_pad)
    return dict(wp=wp, bp=bp, n_words=n_words, emb_dim=emb_dim,
                tv=tv, v_pad=v_pad)


def pred_layer_forward(x, y, params, *, row_tile=512,
                       scores_dtype=jnp.bfloat16):
    """PredLayer.forward: x (..., emb_dim), y (N,) int labels.
    Returns (scores (N, n_words), mean cross-entropy loss)."""
    wp, bp = params["wp"], params["bp"]
    n_words, emb_dim = params["n_words"], params["emb_dim"]
    tv, v_pad = params["tv"], params["v_pad"]

    x2d = x.reshape(-1, emb_dim)
    n_rows = x2d.shape[0]

    # Row tile: multiple of 16 (bf16 sublane packing) and big enough to make
    # the inner loop MXU-bound rather than weight-DMA-bound.
    rows16 = _round_up(n_rows, 16)
    tn = min(row_tile, rows16)
    # v7x megacore: prefer >=2 row tiles so the "parallel" axis can actually
    # be sharded across both TensorCores (no-op for tiny row counts).
    if tn == rows16 and rows16 >= 32:
        tn = _round_up(rows16 // 2, 16)
    n_pad = _round_up(n_rows, tn)

    # Shrink tiles until the double-buffered footprint fits the VMEM cap.
    cap = _vmem_cap_bytes()
    score_bytes = jnp.dtype(scores_dtype).itemsize

    def footprint(tn_, tv_):
        per_buf = (tn_ * emb_dim * 2          # x tile   (bf16)
                   + emb_dim * tv_ * 2        # W^T tile (bf16)
                   + tv_ * 4                  # bias tile
                   + tn_ * tv_ * score_bytes  # scores tile
                   + tn_ * 4)                 # lse tile
        return 2 * per_buf + 2 * tn_ * 4 + (4 << 20)

    while footprint(tn, tv) > cap:
        if tv % 256 == 0 and tv > 512:
            tv //= 2                          # still a multiple of 128 dividing v_pad
        elif tn > 256:
            tn = max(256, _round_up(tn // 2, 16))
            n_pad = _round_up(n_rows, tn)
        else:
            break
    vmem_bytes = int(min(max(footprint(tn, tv), 16 << 20), cap))

    # Activations: bf16 for the MXU, pad rows only when actually needed.
    xp = x2d.astype(jnp.bfloat16)
    if n_pad != n_rows:
        xp = jnp.pad(xp, ((0, n_pad - n_rows), (0, 0)))

    grid = (n_pad // tn, v_pad // tv)

    scores_p, lse_p = pl.pallas_call(
        _pred_kernel,
        out_shape=(
            jax.ShapeDtypeStruct((n_pad, v_pad), scores_dtype),
            jax.ShapeDtypeStruct((n_pad, 1), jnp.float32),
        ),
        grid_spec=pltpu.PrefetchScalarGridSpec(
            num_scalar_prefetch=0,
            grid=grid,
            in_specs=[
                # x block index is constant across the inner (vocab) axis, so
                # it is DMA'd only once per row tile.
                pl.BlockSpec((tn, emb_dim), lambda i, j: (i, 0)),
                pl.BlockSpec((emb_dim, tv), lambda i, j: (0, j)),   # W^T (D,V)
                pl.BlockSpec((1, tv), lambda i, j: (0, j)),         # bias
            ],
            out_specs=[
                pl.BlockSpec((tn, tv), lambda i, j: (i, j)),        # scores
                pl.BlockSpec((tn, 1), lambda i, j: (i, 0)),         # per-row LSE
            ],
            scratch_shapes=[
                pltpu.VMEM((tn, 1), jnp.float32),   # running max
                pltpu.VMEM((tn, 1), jnp.float32),   # running sum-exp
            ],
        ),
        compiler_params=pltpu.CompilerParams(
            dimension_semantics=("parallel", "arbitrary"),
            vmem_limit_bytes=vmem_bytes),
    )(xp, wp, bp)

    # Skip slice copies entirely when no padding was applied.
    scores = scores_p
    if n_pad != n_rows:
        scores = scores[:n_rows]
    if v_pad != n_words:
        scores = scores[:, :n_words]
    lse = lse_p[:n_rows, 0]

    # Label-logit gather moved out of the inner loop (tiny N-element gather).
    # TODO(synk): no ignore_index / padding-label semantics (the reference
    # module uses plain F.cross_entropy(reduction='mean') over all rows).
    y_idx = y.reshape(-1, 1).astype(jnp.int32)
    lbl = jnp.take_along_axis(scores, y_idx, axis=1)[:, 0].astype(jnp.float32)
    loss = jnp.mean(lse - lbl)
    return scores, loss


if __name__ == "__main__":
    # Small shapes consistent with the module: emb_dim=32, n_words=128,
    # x of shape (batch=2, seq=4, emb_dim=32) -> N = 8 rows.
    n_words, emb_dim = 128, 32
    batch, seq = 2, 4
    n_rows = batch * seq

    key = jax.random.PRNGKey(0)
    kx, kw, kb, ky = jax.random.split(key, 4)

    x = jax.random.normal(kx, (batch, seq, emb_dim), dtype=jnp.float32)
    # Deterministic "Linear" parameters (synthetic, nn.Linear-like scale).
    bound = 1.0 / (emb_dim ** 0.5)
    weight = jax.random.uniform(kw, (n_words, emb_dim), jnp.float32, -bound, bound)
    bias = jax.random.uniform(kb, (n_words,), jnp.float32, -bound, bound)
    y = jax.random.randint(ky, (n_rows,), 0, n_words, dtype=jnp.int32)

    # Parameter prep is done once and reused across forward calls.
    params = prepare_pred_params(weight, bias)
    scores, loss = pred_layer_forward(x, y, params)
    jax.block_until_ready((scores, loss))

    # Reference check in plain f32 JAX (same math as F.cross_entropy mean).
    ref_scores = x.reshape(-1, emb_dim) @ weight.T + bias
    ref_lse = jax.scipy.special.logsumexp(ref_scores, axis=-1)
    ref_loss = jnp.mean(ref_lse - ref_scores[jnp.arange(n_rows), y])
    # Tolerances loosened vs. the f32 reference: MXU inputs and the returned
    # scores are bf16 (f32 accumulation / logsumexp math in-kernel).
    assert scores.shape == (n_rows, n_words)
    assert jnp.allclose(scores.astype(jnp.float32), ref_scores,
                        atol=5e-2, rtol=5e-2), "scores mismatch"
    assert jnp.allclose(loss, ref_loss, atol=2e-2, rtol=2e-2), "loss mismatch"

    print("KERNEL_OK")
</pallas_src>

<mosaic_0001>
module attributes {stable_mosaic.version = 11 : i64} {
  func.func @_pred_kernel(%arg0: i32, %arg1: i32, %arg2: memref<16x32xbf16, #tpu.memory_space<vmem>>, %arg3: memref<32x128xbf16, #tpu.memory_space<vmem>>, %arg4: memref<1x128xf32, #tpu.memory_space<vmem>>, %arg5: memref<16x128xbf16, #tpu.memory_space<vmem>>, %arg6: memref<16x1xf32, #tpu.memory_space<vmem>>, %arg7: memref<16x1xf32, #tpu.memory_space<vmem>>, %arg8: memref<16x1xf32, #tpu.memory_space<vmem>>) attributes {dimension_semantics = [#tpu.dimension_semantics<parallel>, #tpu.dimension_semantics<arbitrary>], iteration_bounds = array<i64: 1, 1>, scalar_prefetch = 0 : i64, scratch_operands = 2 : i64, tpu.core_type = #tpu.core_type<tc>, window_params = [{transform_indices = @transform_0, window_bounds = array<i64: 16, 32>}, {transform_indices = @transform_1, window_bounds = array<i64: 32, 128>}, {transform_indices = @transform_2, window_bounds = array<i64: 1, 128>}, {transform_indices = @transform_3, window_bounds = array<i64: 16, 128>}, {transform_indices = @transform_4, window_bounds = array<i64: 16, 1>}]} {
    %c0_i32 = arith.constant 0 : i32
    %0 = arith.cmpi eq, %arg1, %c0_i32 : i32
    %1 = arith.extui %0 : i1 to i32
    %c0_i32_0 = arith.constant 0 : i32
    %2 = arith.cmpi ne, %1, %c0_i32_0 : i32
    scf.if %2 {
      %cst_20 = arith.constant -1.000000e+30 : f32
      %30 = vector.broadcast %cst_20 : f32 to vector<16x1xf32>
      %c0_21 = arith.constant 0 : index
      %c0_22 = arith.constant 0 : index
      %31 = vector.load %arg7[%c0_21, %c0_22] : memref<16x1xf32, #tpu.memory_space<vmem>>, vector<16x1xf32>
      tpu.vector_store %arg7[%c0_21, %c0_22], %30 {strides = array<i32>} : memref<16x1xf32, #tpu.memory_space<vmem>>, vector<16x1xf32>,
      %cst_23 = arith.constant 0.000000e+00 : f32
      %32 = vector.broadcast %cst_23 : f32 to vector<16x1xf32>
      %c0_24 = arith.constant 0 : index
      %c0_25 = arith.constant 0 : index
      %33 = vector.load %arg8[%c0_24, %c0_25] : memref<16x1xf32, #tpu.memory_space<vmem>>, vector<16x1xf32>
      tpu.vector_store %arg8[%c0_24, %c0_25], %32 {strides = array<i32>} : memref<16x1xf32, #tpu.memory_space<vmem>>, vector<16x1xf32>,
    } else {
    }
    %c0 = arith.constant 0 : index
    %c0_1 = arith.constant 0 : index
    %3 = vector.load %arg2[%c0, %c0_1] : memref<16x32xbf16, #tpu.memory_space<vmem>>, vector<16x32xbf16>
    %c0_2 = arith.constant 0 : index
    %c0_3 = arith.constant 0 : index
    %4 = vector.load %arg3[%c0_2, %c0_3] : memref<32x128xbf16, #tpu.memory_space<vmem>>, vector<32x128xbf16>
    %cst = arith.constant dense<0.000000e+00> : vector<16x128xf32>
    %5 = tpu.matmul %3, %4, %cst {dimension_numbers = #tpu.dot_dimension_numbers<[1], [0], [0], [1], [0, 0, 1, 1], [], []>} : vector<16x32xbf16>, vector<32x128xbf16>, vector<16x128xf32> -> vector<16x128xf32>
    %c0_4 = arith.constant 0 : index
    %c0_5 = arith.constant 0 : index
    %6 = vector.load %arg4[%c0_4, %c0_5] : memref<1x128xf32, #tpu.memory_space<vmem>>, vector<1x128xf32>
    %7 = vector.broadcast %6 : vector<1x128xf32> to vector<16x128xf32>
    %8 = arith.addf %5, %7 : vector<16x128xf32>
    %9 = arith.truncf %8 : vector<16x128xf32> to vector<16x128xbf16>
    %c0_6 = arith.constant 0 : index
    %c0_7 = arith.constant 0 : index
    %10 = vector.load %arg5[%c0_6, %c0_7] : memref<16x128xbf16, #tpu.memory_space<vmem>>, vector<16x128xbf16>
    tpu.vector_store %arg5[%c0_6, %c0_7], %9 {strides = array<i32>} : memref<16x128xbf16, #tpu.memory_space<vmem>>, vector<16x128xbf16>,
    %c0_8 = arith.constant 0 : index
    %c0_9 = arith.constant 0 : index
    %11 = vector.load %arg7[%c0_8, %c0_9] : memref<16x1xf32, #tpu.memory_space<vmem>>, vector<16x1xf32>
    %cst_10 = arith.constant dense<0xFF800000> : vector<16xf32>
    %12 = vector.multi_reduction <maximumf>, %8, %cst_10 [1] : vector<16x128xf32> to vector<16xf32>
    %13 = vector.shape_cast %12 : vector<16xf32> to vector<16x1xf32>
    %14 = arith.maximumf %11, %13 : vector<16x1xf32>
    %c0_11 = arith.constant 0 : index
    %c0_12 = arith.constant 0 : index
    %15 = vector.load %arg8[%c0_11, %c0_12] : memref<16x1xf32, #tpu.memory_space<vmem>>, vector<16x1xf32>
    %16 = arith.subf %11, %14 : vector<16x1xf32>
    %17 = math.exp %16 : vector<16x1xf32>
    %18 = arith.mulf %15, %17 : vector<16x1xf32>
    %19 = vector.broadcast %14 : vector<16x1xf32> to vector<16x128xf32>
    %20 = arith.subf %8, %19 : vector<16x128xf32>
    %21 = math.exp %20 : vector<16x128xf32>
    %cst_13 = arith.constant dense<0.000000e+00> : vector<16xf32>
    %22 = vector.multi_reduction <add>, %21, %cst_13 [1] : vector<16x128xf32> to vector<16xf32>
    %23 = vector.shape_cast %22 : vector<16xf32> to vector<16x1xf32>
    %24 = arith.addf %18, %23 : vector<16x1xf32>
    %c0_14 = arith.constant 0 : index
    %c0_15 = arith.constant 0 : index
    %25 = vector.load %arg8[%c0_14, %c0_15] : memref<16x1xf32, #tpu.memory_space<vmem>>, vector<16x1xf32>
    tpu.vector_store %arg8[%c0_14, %c0_15], %24 {strides = array<i32>} : memref<16x1xf32, #tpu.memory_space<vmem>>, vector<16x1xf32>,
    %c0_16 = arith.constant 0 : index
    %c0_17 = arith.constant 0 : index
    %26 = vector.load %arg7[%c0_16, %c0_17] : memref<16x1xf32, #tpu.memory_space<vmem>>, vector<16x1xf32>
    tpu.vector_store %arg7[%c0_16, %c0_17], %14 {strides = array<i32>} : memref<16x1xf32, #tpu.memory_space<vmem>>, vector<16x1xf32>,
    %c0_i32_18 = arith.constant 0 : i32
    %27 = arith.cmpi eq, %arg1, %c0_i32_18 : i32
    %28 = arith.extui %27 : i1 to i32
    %c0_i32_19 = arith.constant 0 : i32
    %29 = arith.cmpi ne, %28, %c0_i32_19 : i32
    scf.if %29 {
      %c0_20 = arith.constant 0 : index
      %c0_21 = arith.constant 0 : index
      %30 = vector.load %arg7[%c0_20, %c0_21] : memref<16x1xf32, #tpu.memory_space<vmem>>, vector<16x1xf32>
      %c0_22 = arith.constant 0 : index
      %c0_23 = arith.constant 0 : index
      %31 = vector.load %arg8[%c0_22, %c0_23] : memref<16x1xf32, #tpu.memory_space<vmem>>, vector<16x1xf32>
      %32 = math.log %31 : vector<16x1xf32>
      %33 = arith.addf %30, %32 : vector<16x1xf32>
      %c0_24 = arith.constant 0 : index
      %c0_25 = arith.constant 0 : index
      %34 = vector.load %arg6[%c0_24, %c0_25] : memref<16x1xf32, #tpu.memory_space<vmem>>, vector<16x1xf32>
      tpu.vector_store %arg6[%c0_24, %c0_25], %33 {strides = array<i32>} : memref<16x1xf32, #tpu.memory_space<vmem>>, vector<16x1xf32>,
    } else {
    }
    return
  }
  func.func @transform_0(%arg0: i32, %arg1: i32) -> (i32, i32) {
    %c0_i32 = arith.constant 0 : i32
    %c0_i32_0 = arith.constant 0 : i32
    return %arg0, %c0_i32 : i32, i32
  }
  func.func @transform_1(%arg0: i32, %arg1: i32) -> (i32, i32) {
    %c0_i32 = arith.constant 0 : i32
    %c0_i32_0 = arith.constant 0 : i32
    return %c0_i32, %arg1 : i32, i32
  }
  func.func @transform_2(%arg0: i32, %arg1: i32) -> (i32, i32) {
    %c0_i32 = arith.constant 0 : i32
    %c0_i32_0 = arith.constant 0 : i32
    return %c0_i32, %arg1 : i32, i32
  }
  func.func @transform_3(%arg0: i32, %arg1: i32) -> (i32, i32) {
    %c0_i32 = arith.constant 0 : i32
    return %arg0, %arg1 : i32, i32
  }
  func.func @transform_4(%arg0: i32, %arg1: i32) -> (i32, i32) {
    %c0_i32 = arith.constant 0 : i32
    %c0_i32_0 = arith.constant 0 : i32
    return %arg0, %c0_i32 : i32, i32
  }
}

</mosaic_0001>

<bundles_post_ra>
// kernel: tpu_custom_call.1
= control target key start
LH: loop header
LB: loop body
LE: loop exit
PB: predicated region body
PF: predicated region fallthrough
CT: control target
= control target key end

     0   :  { %10 = vsyncpa [#allocation5], 0  ;;  %s410_s0 = inlined_call_operand.hbm [shape: bf16[16,32], index: 0, kind: input, shape index: {}]   ;;  %s411_s1 = inlined_call_operand.hbm [shape: bf16[32,128], index: 1, kind: input, shape index: {}]   ;;  %s412_s2 = inlined_call_operand.vmem [shape: f32[1,128], index: 2, kind: input, shape index: {}]   ;;  %s413_s3 = inlined_call_operand.hbm [shape: bf16[16,128], index: 3, kind: output, shape index: {0}]   ;;  %s414_s4 = inlined_call_operand.vmem [shape: f32[16,1], index: 4, kind: output, shape index: {1}]  }
   0x1   :  { %11 = vsyncpa [#allocation8], 0 }
   0x2   :  { %12 = vsyncpa [#allocation6], 0  ;;  %s339_s15 = smov [#allocation4]  }
   0x3   :  { %s18_s16 = sshll.u32 %s339_s15, 4  ;;  %s19_s16 = int_to_ptr.vmem [resolvable:$true] %s18_s16 }
   0x4   :  { %s281_s17 = scalar_lea.vmem %s19_s16, 128  ;;  %p286_p1 = scmp.lt.s32.totalorder %s19_s16, %s19_s16 }
   0x5   :  { %p282_p0 = scmp.ne.s32.totalorder %s19_s16, %s281_s17  ;;  %p287_p2 = scmp.lt.s32.totalorder %s281_s17, %s281_s17 }
   0x7   :  { %p288_p3 = por %p287_p2, %p286_p1 }
   0x9   :  { %p289_p4 = pnand %p288_p3, %p282_p0 }
   0xb   :  { %292 = shalt.err (!%p289_p4)
}
   0xc   :  { %s340_s18 = smov 64   ;;  %s341_s19 = smov 4  }
   0xd   :  { %24 = dma.hbm_to_vmem [thread:$0]  %s410_s0, 128, %s19_s16, [#allocation5], %s340_s18, %s340_s18, %s341_s19  }
   0xe   :  { %s342_s22 = smov [#allocation7]  }
   0xf   :  { %s30_s23 = sshll.u32 %s342_s22, 4  ;;  %s31_s23 = int_to_ptr.vmem [resolvable:$true] %s30_s23 }
  0x10   :  { %s301_s24 = scalar_lea.vmem %s31_s23, 256  ;;  %p306_p6 = scmp.lt.s32.totalorder %s31_s23, %s31_s23 }
  0x11   :  { %p302_p5 = scmp.ne.s32.totalorder %s31_s23, %s301_s24  ;;  %p307_p7 = scmp.lt.s32.totalorder %s301_s24, %s301_s24 }
  0x13   :  { %p308_p8 = por %p307_p7, %p306_p6 }
  0x15   :  { %p309_p9 = pnand %p308_p8, %p302_p5 }
  0x17   :  { %312 = shalt.err (!%p309_p9)
}
  0x18   :  { %36 = dma.hbm_to_vmem [thread:$0]  %s411_s1, 256, %s31_s23, [#allocation8], %s340_s18, %s340_s18, %s341_s19  }
  0x19   :  { %333 = dma.done.wait [#allocation5], 128  }
  0x1a   :  { %334 = vsyncadd [#allocation5], 4294967168 }
  0x1b   :  { %335 = dma.done.wait [#allocation8], 256  }
  0x1c   :  { %336 = vsyncadd [#allocation8], 4294967040  ;;  %vm50_vm0 = vcmask 7168   ;;  %v343_v0 = vmov 0.0   ;;  %vm344_vm1 = vmmov 0   ;;  %v258_v1 = vld [vmem:[#allocation7 + $0x8] sm:$0xff]  }
  0x1d   :  { %53 = vst.msk [vmem:[#allocation3] sm:$0xff] %vm50_vm0, %v343_v0  ;;  %54 = vst.msk [vmem:[#allocation3 + $0x8] sm:$0xff] %vm50_vm0, %v343_v0  ;;  %239 = vmatprep.subr.bf16.mxu0 %v343_v0  ;;  %243 = vmatprep.mubr.msk.bf16.mxu0 %vm344_vm1, %v343_v0  ;;  %v259_v2 = vld [vmem:[#allocation7] sm:$0xff]   ;;  %v260_v3 = vld [vmem:[#allocation4] sm:$0xff]   ;;  %vm85_vm2 = vcmask 261120   ;;  %v346_v13 = vmov 0  }
  0x1e   :  { %240 = vmatpush3.bf16.msra.mxu0 %v258_v1  ;;  %v345_v4 = vmov -1e+30   ;;  %v222_v5 = vld [vmem:[%s412_s2] ss:$0 sm:$0xff]  ;;  %256 = vset.pattern.permute.xlu1 %v346_v13  ;;  %s347_s2 = smov [#allocation9]  }
  0x1f   :  { %241 = vmatprep.subr.bf16.mxu0 %v343_v0  ;;  %51 = vst.msk [vmem:[#allocation2] sm:$0xff] %vm50_vm0, %v345_v4  ;;  %52 = vst.msk [vmem:[#allocation2 + $0x8] sm:$0xff] %vm50_vm0, %v345_v4  ;;  %257 = vset.pattern.permute.xlu0 %v346_v13  ;;  %s205_s27 = sshll.u32 %s347_s2, 4  ;;  %s206_s27 = int_to_ptr.vmem [resolvable:$true] %s205_s27 }
  0x20   :  { %s313_s28 = scalar_lea.vmem %s206_s27, 128  ;;  %p318_p11 = scmp.lt.s32.totalorder %s206_s27, %s206_s27 }
  0x21   :  { %p314_p10 = scmp.ne.s32.totalorder %s206_s27, %s313_s28  ;;  %p319_p12 = scmp.lt.s32.totalorder %s313_s28, %s313_s28 }
  0x22   :  { %242 = vmatpush3.bf16.msra.mxu0 %v259_v2 }
  0x23   :  { %p320_p13 = por %p319_p12, %p318_p11 }
  0x25   :  { %244 = vmatmul.mubr.msk.bf16.vlgmr.msra.gmra.mxu0 %vm85_vm2, %v260_v3  ;;  %p321_p0 = pnand %p320_p13, %p314_p10 }
  0x26   :  { %v140_v14 = vld [vmem:[#allocation2] sm:$0xff]  ;;  %v141_v17 = vld [vmem:[#allocation2 + $0x8] sm:$0xff] }
  0xe5   :  { %v123_v6 = vpop.f32.mrf.mxu0 }
  0xe6   :  { %v124_v7 = vadd.f32 %v222_v5, %v123_v6 }
  0xe7   :  { %v245_v8 = vpop.f32.mrf.mxu0 }
  0xe8   :  { %142 = vmax.xlane.f32.xlu0 %v124_v7 }
  0xe9   :  { %v126_v9 = vpop.f32.mrf.mxu0 }
  0xea   :  { %v127_v10 = vadd.f32 %v222_v5, %v126_v9 }
  0xeb   :  { %v246_v11 = vpop.f32.mrf.mxu0 }
  0xec   :  { %144 = vmax.xlane.f32.xlu0 %v127_v10  ;;  %v234_v12 = vpack.c.bf16 %v127_v10, %v124_v7 }
  0xee   :  { %235 = vst [vmem:[#allocation9] sm:$0xff] %v234_v12  }
 0x171   :  { %v143_v15 = vpop.xlane.xlu0 %142 }
 0x172   :  { %v146_v16 = vmax.f32 %v140_v14, %v143_v15 }
 0x174   :  { %v150_v18 = vsub.f32 %v140_v14, %v146_v16  ;;  %183 = vst.msk [vmem:[#allocation2] sm:$0xff] %vm50_vm0, %v146_v16  ;;  %160 = vperm.xlu1 %256, %v146_v16  }
 0x175   :  { %v145_v19 = vpop.xlane.xlu0 %144 }
 0x176   :  { %v147_v20 = vmax.f32 %v141_v17, %v145_v19 }
 0x178   :  { %v151_v21 = vsub.f32 %v141_v17, %v147_v20  ;;  %184 = vst.msk [vmem:[#allocation2 + $0x8] sm:$0xff] %vm50_vm0, %v147_v20  ;;  %165 = vperm.xlu1 %256, %v147_v20  }
 0x1ef   :  { %v161_v22 = vpop.permute.xlu1 %160 }
 0x1f0   :  { %v168_v23 = vsub.f32 %v124_v7, %v161_v22 }
 0x1f2   :  { %v170_v24 = vmul.f32 1.442695, %v168_v23 }
 0x1f3   :  { %v166_v25 = vpop.permute.xlu1 %165 }
 0x1f4   :  { %261 = vpow2.f32 %v170_v24  ;;  %v169_v26 = vsub.f32 %v127_v10, %v166_v25 }
 0x1f6   :  { %v172_v27 = vmul.f32 1.442695, %v169_v26 }
 0x1f8   :  { %263 = vpow2.f32 %v172_v27 }
 0x201   :  { %v262_v28 = vpop.eup %261 }
 0x202   :  { %174 = vadd.xlane.f32.xlu0 %v262_v28 }
 0x205   :  { %v264_v29 = vpop.eup %263 }
 0x206   :  { %176 = vadd.xlane.f32.xlu1 %v264_v29 }
 0x207   :  { %324 = shalt.err (!%p321_p0)
}
 0x208   :  { %211 = dma.vmem_to_hbm [thread:$0]  %s206_s27, 128, %s413_s3, [#allocation6], %s340_s18, %s340_s18, %s341_s19   ;;  %v152_v30 = vmul.f32 1.442695, %v150_v18  ;;  %v154_v31 = vmul.f32 1.442695, %v151_v21 }
 0x209   :  { %v148_v33 = vld [vmem:[#allocation3] sm:$0xff]  ;;  %v149_v37 = vld [vmem:[#allocation3 + $0x8] sm:$0xff]  ;;  %v188_v46 = vld [vmem:[#allocation2] sm:$0xff] }
 0x20a   :  { %265 = vpow2.f32 %v152_v30  ;;  %v189_v50 = vld [vmem:[#allocation2 + $0x8] sm:$0xff] }
 0x20b   :  { %267 = vpow2.f32 %v154_v31 }
 0x217   :  { %v266_v32 = vpop.eup %265 }
 0x218   :  { %v156_v34 = vmul.f32 %v266_v32, %v148_v33  ;;  %v268_v35 = vpop.eup %267 }
 0x219   :  { %v157_v39 = vmul.f32 %v268_v35, %v149_v37 }
 0x28b   :  { %v175_v36 = vpop.xlane.xlu0 %174 }
 0x28c   :  { %v178_v38 = vadd.f32 %v175_v36, %v156_v34 }
 0x28e   :  { %181 = vst.msk [vmem:[#allocation3] sm:$0xff] %vm50_vm0, %v178_v38 }
 0x28f   :  { %v177_v40 = vpop.xlane.xlu1 %176 }
 0x290   :  { %v179_v41 = vadd.f32 %v177_v40, %v157_v39 }
 0x292   :  { %182 = vst.msk [vmem:[#allocation3 + $0x8] sm:$0xff] %vm50_vm0, %v179_v41 }
 0x295   :  { %v190_v42 = vld [vmem:[#allocation3] sm:$0xff] }
 0x296   :  { %269 = vlog2.f32 %v190_v42 }
 0x299   :  { %v191_v43 = vld [vmem:[#allocation3 + $0x8] sm:$0xff] }
 0x29a   :  { %271 = vlog2.f32 %v191_v43 }
 0x2a3   :  { %v270_v44 = vpop.eup %269 }
 0x2a4   :  { %v193_v45 = vmul.f32 0.6931472, %v270_v44 }
 0x2a6   :  { %v196_v47 = vadd.f32 %v193_v45, %v188_v46 }
 0x2a7   :  { %v272_v48 = vpop.eup %271 }
 0x2a8   :  { %198 = vst.msk [vmem:[%s414_s4] sm:$0xff] %vm50_vm0, %v196_v47  ;;  %v195_v49 = vmul.f32 0.6931472, %v272_v48 }
 0x2aa   :  { %v197_v51 = vadd.f32 %v195_v49, %v189_v50 }
 0x2ac   :  { %199 = vst.msk [vmem:[%s414_s4 + $0x8] sm:$0xff] %vm50_vm0, %v197_v51 }
 0x2ad   :  { %337 = dma.done.wait [#allocation6], 128  }
 0x2ae   :  { %338 = vsyncadd [#allocation6], 4294967168 }
 0x2af   :  { %219 = vsyncpa [#allocation5], 1 }
 0x2b0   :  { %220 = vsyncpa [#allocation8], 1 }
 0x2b1   :  { %221 = vsyncpa [#allocation6], 1 }

</bundles_post_ra>
